<compile_context>
chip_gen: v5e
topology: v5e:2x2
jax: 0.10.0
libtpu: 0.0.40
codegen_flags: <defaults>
</compile_context>

<pallas_src>
import functools

import jax
import jax.numpy as jnp
from jax.experimental import pallas as pl
from jax.experimental.pallas import tpu as pltpu

EPS = 1e-5
NEG_SLOPE = 0.2
_VMEM_LIMIT = 32 * 1024 * 1024  # explicit scoped-VMEM cap, safe on v5e/v6e/v7x


def _conv_stats_kernel(w_ref, p_ref, y_ref, sum_ref, sq_ref):
    """Pass 1: lane-dense conv matmul tile + global per-channel sum / sum-of-squares."""
    # (Cout, K) bf16 @ (K, TM) bf16 -> (Cout, TM) f32 on the MXU.
    y = jnp.dot(w_ref[...], p_ref[...], preferred_element_type=jnp.float32)
    # Store the intermediate in bf16 (halves the y write/read HBM stream); stats stay f32 below.
    y_ref[...] = y.astype(y_ref.dtype)

    @pl.when(pl.program_id(0) == 0)
    def _init():
        sum_ref[...] = jnp.zeros_like(sum_ref)
        sq_ref[...] = jnp.zeros_like(sq_ref)

    # Cross-lane reductions (XLU slot) on the f32 accumulator, accumulated across all M tiles.
    sum_ref[...] += jnp.sum(y, axis=1, keepdims=True)
    sq_ref[...] += jnp.sum(y * y, axis=1, keepdims=True)


def _bn_lrelu_kernel(y_ref, scale_ref, shift_ref, o_ref):
    """Pass 2: fused BN affine (single FMA per element, in f32) + LeakyReLU(0.2)."""
    z = y_ref[...].astype(jnp.float32) * scale_ref[...] + shift_ref[...]
    o_ref[...] = jnp.where(z >= 0.0, z, NEG_SLOPE * z)


@functools.partial(jax.jit, static_argnames=("stride", "tile_m"))
def conv_block_discriminator(x_nchw, weight_oihw, bias, gamma, beta, *,
                             stride=1, tile_m=1024):
    N, Cin, H, W = x_nchw.shape
    Cout = weight_oihw.shape[0]
    K = 9 * Cin

    # Conv bias is intentionally unused: (y+b) - mean(y+b) == y - mean(y) and var is unchanged,
    # so train-mode BatchNorm cancels it exactly.  (One fewer VMEM operand + VPU pass.)
    del bias

    # --- glue: im2col laid out as (K, M) so Pallas tiles are lane-dense along M -----------------
    x = jnp.transpose(x_nchw, (0, 2, 3, 1))                              # NHWC
    xp = jnp.pad(x, ((0, 0), (1, 1), (1, 1), (0, 0)))
    Ho = (H + 2 - 3) // stride + 1
    Wo = (W + 2 - 3) // stride + 1
    taps = []
    for kh in range(3):
        for kw in range(3):
            taps.append(xp[:,
                           kh:kh + (Ho - 1) * stride + 1:stride,
                           kw:kw + (Wo - 1) * stride + 1:stride,
                           :])                                           # (N, Ho, Wo, Cin)
    p = jnp.stack(taps, axis=0)                                          # (9, N, Ho, Wo, Cin)
    p = jnp.transpose(p, (0, 4, 1, 2, 3)).reshape(K, N * Ho * Wo)        # (K, M), K=(kh,kw,cin)

    M = N * Ho * Wo
    # Lane tiles must be multiples of 128; clamp so tiny inputs do not over-pad while large
    # layers still get fat tiles (fewer grid steps -> less per-step overhead).
    tile_m = max(128, ((tile_m + 127) // 128) * 128)
    tile_m = min(tile_m, ((M + 127) // 128) * 128)
    num_tiles = pl.cdiv(M, tile_m)
    m_pad = num_tiles * tile_m
    if m_pad != M:
        # zero columns -> zero conv outputs -> contribute nothing to sum/sumsq (no bias),
        # so BN stats remain exact; the padded output columns are sliced off at the end.
        p = jnp.pad(p, ((0, 0), (0, m_pad - M)))

    # bf16 inputs feed the MXU fast path and halve the dominant HBM stream; f32 accumulation.
    p = p.astype(jnp.bfloat16)
    # weight (Cout, Cin, 3, 3) -> (Cout, kh, kw, Cin) -> (Cout, K), matching patch K order.
    w2d = jnp.transpose(weight_oihw, (0, 2, 3, 1)).reshape(Cout, K).astype(jnp.bfloat16)

    # --- pass 1: conv matmul tiles + global per-channel sum / sumsq -----------------------------
    y_pad, sums, sumsq = pl.pallas_call(
        _conv_stats_kernel,
        grid=(num_tiles,),
        in_specs=[
            pl.BlockSpec((Cout, K), lambda i: (0, 0)),            # weights (tiny, VMEM-resident)
            pl.BlockSpec((K, tile_m), lambda i: (0, i)),          # im2col tile, double-buffered
        ],
        out_specs=[
            pl.BlockSpec((Cout, tile_m), lambda i: (0, i)),       # lane-dense bf16 conv output
            pl.BlockSpec((Cout, 1), lambda i: (0, 0)),            # per-channel sum (accumulator)
            pl.BlockSpec((Cout, 1), lambda i: (0, 0)),            # per-channel sum of squares
        ],
        out_shape=[
            jax.ShapeDtypeStruct((Cout, m_pad), jnp.bfloat16),
            jax.ShapeDtypeStruct((Cout, 1), jnp.float32),
            jax.ShapeDtypeStruct((Cout, 1), jnp.float32),
        ],
        compiler_params=pltpu.CompilerParams(
            dimension_semantics=("arbitrary",),                   # stats accumulate across tiles
            vmem_limit_bytes=_VMEM_LIMIT),
    )(w2d, p)

    # --- fold train-mode BN (biased variance) + affine into one scale/shift per channel ---------
    mean = sums[:, 0] / M
    var = jnp.maximum(sumsq[:, 0] / M - mean * mean, 0.0)
    scale = (gamma.astype(jnp.float32) * jax.lax.rsqrt(var + EPS)).reshape(Cout, 1)
    shift = (beta.astype(jnp.float32) - mean * scale[:, 0]).reshape(Cout, 1)

    # --- pass 2: y*scale + shift, LeakyReLU (megacore-parallel over M tiles) ---------------------
    out_pad = pl.pallas_call(
        _bn_lrelu_kernel,
        grid=(num_tiles,),
        in_specs=[
            pl.BlockSpec((Cout, tile_m), lambda i: (0, i)),
            pl.BlockSpec((Cout, 1), lambda i: (0, 0)),
            pl.BlockSpec((Cout, 1), lambda i: (0, 0)),
        ],
        out_specs=pl.BlockSpec((Cout, tile_m), lambda i: (0, i)),
        out_shape=jax.ShapeDtypeStruct((Cout, m_pad), jnp.float32),
        compiler_params=pltpu.CompilerParams(
            dimension_semantics=("parallel",),                    # both TCs on v7x
            vmem_limit_bytes=_VMEM_LIMIT),
    )(y_pad, scale, shift)

    out = out_pad[:, :M].reshape(Cout, N, Ho, Wo)
    return jnp.transpose(out, (1, 0, 2, 3))                       # single transpose back to NCHW


def _reference(x, weight, bias, gamma, beta, stride=1):
    # pure-JAX f32 reference reproducing the PyTorch forward (train-mode BN, with conv bias)
    y = jax.lax.conv_general_dilated(
        x, weight, window_strides=(stride, stride), padding=((1, 1), (1, 1)),
        dimension_numbers=("NCHW", "OIHW", "NCHW"),
    ) + bias[None, :, None, None]
    mean = y.mean(axis=(0, 2, 3), keepdims=True)
    var = ((y - mean) ** 2).mean(axis=(0, 2, 3), keepdims=True)
    y = (y - mean) * jax.lax.rsqrt(var + EPS)
    y = y * gamma[None, :, None, None] + beta[None, :, None, None]
    return jnp.where(y >= 0.0, y, NEG_SLOPE * y)


if __name__ == "__main__":
    key = jax.random.PRNGKey(0)
    in_channel, stride = 4, 1
    out_channel = in_channel if stride > 1 else in_channel * 2   # == 8

    k_x, k_w, k_b = jax.random.split(key, 3)
    x = jax.random.normal(k_x, (2, in_channel, 16, 16), dtype=jnp.float32)
    weight = 0.1 * jax.random.normal(k_w, (out_channel, in_channel, 3, 3), jnp.float32)
    bias = 0.1 * jax.random.normal(k_b, (out_channel,), jnp.float32)
    gamma = jnp.ones((out_channel,), jnp.float32)                # BatchNorm2d default init
    beta = jnp.zeros((out_channel,), jnp.float32)

    # tile_m=384 at this toy size so the grid has >1 tile AND the M zero-padding path is
    # exercised (M=512 -> 2 tiles of 384, 256 padded columns); production default is tile_m=1024.
    out = conv_block_discriminator(x, weight, bias, gamma, beta, stride=stride, tile_m=384)
    out = jax.block_until_ready(out)
    ref = _reference(x, weight, bias, gamma, beta, stride=stride)
    assert out.shape == ref.shape == (2, out_channel, 16, 16)
    err = float(jnp.max(jnp.abs(out - ref)))
    assert err < 5e-2, err                                       # bf16-matmul vs f32 reference

    # stride=2 branch (out_channel == in_channel) — exercises the tile-clamping / single-tile path.
    w2 = 0.1 * jax.random.normal(k_w, (in_channel, in_channel, 3, 3), jnp.float32)
    b2 = 0.1 * jax.random.normal(k_b, (in_channel,), jnp.float32)
    g2 = jnp.ones((in_channel,), jnp.float32)
    be2 = jnp.zeros((in_channel,), jnp.float32)
    out2 = conv_block_discriminator(x, w2, b2, g2, be2, stride=2)
    out2 = jax.block_until_ready(out2)
    ref2 = _reference(x, w2, b2, g2, be2, stride=2)
    assert out2.shape == ref2.shape == (2, in_channel, 8, 8)
    err2 = float(jnp.max(jnp.abs(out2 - ref2)))
    assert err2 < 5e-2, err2

    print("KERNEL_OK")
</pallas_src>

<mosaic_0001>
module attributes {stable_mosaic.version = 11 : i64} {
  func.func @_conv_stats_kernel(%arg0: i32, %arg1: memref<8x36xbf16, #tpu.memory_space<vmem>>, %arg2: memref<36x384xbf16, #tpu.memory_space<vmem>>, %arg3: memref<8x384xbf16, #tpu.memory_space<vmem>>, %arg4: memref<8x1xf32, #tpu.memory_space<vmem>>, %arg5: memref<8x1xf32, #tpu.memory_space<vmem>>) attributes {dimension_semantics = [#tpu.dimension_semantics<arbitrary>], iteration_bounds = array<i64: 2>, scalar_prefetch = 0 : i64, scratch_operands = 0 : i64, tpu.core_type = #tpu.core_type<tc>, window_params = [{pipeline_mode = #tpu.pipeline_mode<synchronous>, transform_indices = @transform_0, window_bounds = array<i64: 8, 36>}, {transform_indices = @transform_1, window_bounds = array<i64: 36, 384>}, {transform_indices = @transform_2, window_bounds = array<i64: 8, 384>}, {pipeline_mode = #tpu.pipeline_mode<synchronous>, transform_indices = @transform_3, window_bounds = array<i64: 8, 1>}, {pipeline_mode = #tpu.pipeline_mode<synchronous>, transform_indices = @transform_4, window_bounds = array<i64: 8, 1>}]} {
    %c0 = arith.constant 0 : index
    %c0_0 = arith.constant 0 : index
    %0 = vector.load %arg1[%c0, %c0_0] : memref<8x36xbf16, #tpu.memory_space<vmem>>, vector<8x36xbf16>
    %c0_1 = arith.constant 0 : index
    %c0_2 = arith.constant 0 : index
    %1 = vector.load %arg2[%c0_1, %c0_2] : memref<36x384xbf16, #tpu.memory_space<vmem>>, vector<36x384xbf16>
    %cst = arith.constant dense<0.000000e+00> : vector<8x384xf32>
    %2 = tpu.matmul %0, %1, %cst {dimension_numbers = #tpu.dot_dimension_numbers<[1], [0], [0], [1], [0, 0, 1, 1], [], []>} : vector<8x36xbf16>, vector<36x384xbf16>, vector<8x384xf32> -> vector<8x384xf32>
    %3 = arith.truncf %2 : vector<8x384xf32> to vector<8x384xbf16>
    %c0_3 = arith.constant 0 : index
    %c0_4 = arith.constant 0 : index
    %4 = vector.load %arg3[%c0_3, %c0_4] : memref<8x384xbf16, #tpu.memory_space<vmem>>, vector<8x384xbf16>
    tpu.vector_store %arg3[%c0_3, %c0_4], %3 {strides = array<i32>} : memref<8x384xbf16, #tpu.memory_space<vmem>>, vector<8x384xbf16>,
    %c0_i32 = arith.constant 0 : i32
    %5 = arith.cmpi eq, %arg0, %c0_i32 : i32
    %6 = arith.extui %5 : i1 to i32
    %c0_i32_5 = arith.constant 0 : i32
    %7 = arith.cmpi ne, %6, %c0_i32_5 : i32
    scf.if %7 {
      %cst_16 = arith.constant 0.000000e+00 : f32
      %19 = vector.broadcast %cst_16 : f32 to vector<8x1xf32>
      %c0_17 = arith.constant 0 : index
      %c0_18 = arith.constant 0 : index
      %20 = vector.load %arg4[%c0_17, %c0_18] : memref<8x1xf32, #tpu.memory_space<vmem>>, vector<8x1xf32>
      tpu.vector_store %arg4[%c0_17, %c0_18], %19 {strides = array<i32>} : memref<8x1xf32, #tpu.memory_space<vmem>>, vector<8x1xf32>,
      %cst_19 = arith.constant 0.000000e+00 : f32
      %21 = vector.broadcast %cst_19 : f32 to vector<8x1xf32>
      %c0_20 = arith.constant 0 : index
      %c0_21 = arith.constant 0 : index
      %22 = vector.load %arg5[%c0_20, %c0_21] : memref<8x1xf32, #tpu.memory_space<vmem>>, vector<8x1xf32>
      tpu.vector_store %arg5[%c0_20, %c0_21], %21 {strides = array<i32>} : memref<8x1xf32, #tpu.memory_space<vmem>>, vector<8x1xf32>,
    } else {
    }
    %c0_6 = arith.constant 0 : index
    %c0_7 = arith.constant 0 : index
    %8 = vector.load %arg4[%c0_6, %c0_7] : memref<8x1xf32, #tpu.memory_space<vmem>>, vector<8x1xf32>
    %cst_8 = arith.constant dense<0.000000e+00> : vector<8xf32>
    %9 = vector.multi_reduction <add>, %2, %cst_8 [1] : vector<8x384xf32> to vector<8xf32>
    %10 = vector.shape_cast %9 : vector<8xf32> to vector<8x1xf32>
    %11 = arith.addf %8, %10 : vector<8x1xf32>
    %c0_9 = arith.constant 0 : index
    %c0_10 = arith.constant 0 : index
    %12 = vector.load %arg4[%c0_9, %c0_10] : memref<8x1xf32, #tpu.memory_space<vmem>>, vector<8x1xf32>
    tpu.vector_store %arg4[%c0_9, %c0_10], %11 {strides = array<i32>} : memref<8x1xf32, #tpu.memory_space<vmem>>, vector<8x1xf32>,
    %c0_11 = arith.constant 0 : index
    %c0_12 = arith.constant 0 : index
    %13 = vector.load %arg5[%c0_11, %c0_12] : memref<8x1xf32, #tpu.memory_space<vmem>>, vector<8x1xf32>
    %14 = arith.mulf %2, %2 : vector<8x384xf32>
    %cst_13 = arith.constant dense<0.000000e+00> : vector<8xf32>
    %15 = vector.multi_reduction <add>, %14, %cst_13 [1] : vector<8x384xf32> to vector<8xf32>
    %16 = vector.shape_cast %15 : vector<8xf32> to vector<8x1xf32>
    %17 = arith.addf %13, %16 : vector<8x1xf32>
    %c0_14 = arith.constant 0 : index
    %c0_15 = arith.constant 0 : index
    %18 = vector.load %arg5[%c0_14, %c0_15] : memref<8x1xf32, #tpu.memory_space<vmem>>, vector<8x1xf32>
    tpu.vector_store %arg5[%c0_14, %c0_15], %17 {strides = array<i32>} : memref<8x1xf32, #tpu.memory_space<vmem>>, vector<8x1xf32>,
    return
  }
  func.func @transform_0(%arg0: i32) -> (i32, i32) {
    %c0_i32 = arith.constant 0 : i32
    %c0_i32_0 = arith.constant 0 : i32
    %c0_i32_1 = arith.constant 0 : i32
    return %c0_i32, %c0_i32_0 : i32, i32
  }
  func.func @transform_1(%arg0: i32) -> (i32, i32) {
    %c0_i32 = arith.constant 0 : i32
    %c0_i32_0 = arith.constant 0 : i32
    return %c0_i32, %arg0 : i32, i32
  }
  func.func @transform_2(%arg0: i32) -> (i32, i32) {
    %c0_i32 = arith.constant 0 : i32
    %c0_i32_0 = arith.constant 0 : i32
    return %c0_i32, %arg0 : i32, i32
  }
  func.func @transform_3(%arg0: i32) -> (i32, i32) {
    %c0_i32 = arith.constant 0 : i32
    %c0_i32_0 = arith.constant 0 : i32
    %c0_i32_1 = arith.constant 0 : i32
    return %c0_i32, %c0_i32_0 : i32, i32
  }
  func.func @transform_4(%arg0: i32) -> (i32, i32) {
    %c0_i32 = arith.constant 0 : i32
    %c0_i32_0 = arith.constant 0 : i32
    %c0_i32_1 = arith.constant 0 : i32
    return %c0_i32, %c0_i32_0 : i32, i32
  }
}

module attributes {stable_mosaic.version = 11 : i64} {
  func.func @_bn_lrelu_kernel(%arg0: i32, %arg1: memref<8x384xbf16, #tpu.memory_space<vmem>>, %arg2: memref<8x1xf32, #tpu.memory_space<vmem>>, %arg3: memref<8x1xf32, #tpu.memory_space<vmem>>, %arg4: memref<8x384xf32, #tpu.memory_space<vmem>>) attributes {dimension_semantics = [#tpu.dimension_semantics<parallel>], iteration_bounds = array<i64: 2>, scalar_prefetch = 0 : i64, scratch_operands = 0 : i64, tpu.core_type = #tpu.core_type<tc>, window_params = [{transform_indices = @transform_0, window_bounds = array<i64: 8, 384>}, {pipeline_mode = #tpu.pipeline_mode<synchronous>, transform_indices = @transform_1, window_bounds = array<i64: 8, 1>}, {pipeline_mode = #tpu.pipeline_mode<synchronous>, transform_indices = @transform_2, window_bounds = array<i64: 8, 1>}, {transform_indices = @transform_3, window_bounds = array<i64: 8, 384>}]} {
    %c0 = arith.constant 0 : index
    %c0_0 = arith.constant 0 : index
    %0 = vector.load %arg1[%c0, %c0_0] : memref<8x384xbf16, #tpu.memory_space<vmem>>, vector<8x384xbf16>
    %1 = arith.extf %0 : vector<8x384xbf16> to vector<8x384xf32>
    %c0_1 = arith.constant 0 : index
    %c0_2 = arith.constant 0 : index
    %2 = vector.load %arg2[%c0_1, %c0_2] : memref<8x1xf32, #tpu.memory_space<vmem>>, vector<8x1xf32>
    %3 = vector.broadcast %2 : vector<8x1xf32> to vector<8x384xf32>
    %4 = arith.mulf %1, %3 : vector<8x384xf32>
    %c0_3 = arith.constant 0 : index
    %c0_4 = arith.constant 0 : index
    %5 = vector.load %arg3[%c0_3, %c0_4] : memref<8x1xf32, #tpu.memory_space<vmem>>, vector<8x1xf32>
    %6 = vector.broadcast %5 : vector<8x1xf32> to vector<8x384xf32>
    %7 = arith.addf %4, %6 : vector<8x384xf32>
    %cst = arith.constant 0.000000e+00 : f32
    %8 = vector.broadcast %cst : f32 to vector<8x384xf32>
    %9 = arith.cmpf oge, %7, %8 : vector<8x384xf32>
    %cst_5 = arith.constant 2.000000e-01 : f32
    %10 = vector.broadcast %cst_5 : f32 to vector<8x384xf32>
    %11 = arith.mulf %10, %7 : vector<8x384xf32>
    %12 = arith.select %9, %7, %11 : vector<8x384xi1>, vector<8x384xf32>
    %c0_6 = arith.constant 0 : index
    %c0_7 = arith.constant 0 : index
    %13 = vector.load %arg4[%c0_6, %c0_7] : memref<8x384xf32, #tpu.memory_space<vmem>>, vector<8x384xf32>
    tpu.vector_store %arg4[%c0_6, %c0_7], %12 {strides = array<i32>} : memref<8x384xf32, #tpu.memory_space<vmem>>, vector<8x384xf32>,
    return
  }
  func.func @transform_0(%arg0: i32) -> (i32, i32) {
    %c0_i32 = arith.constant 0 : i32
    %c0_i32_0 = arith.constant 0 : i32
    return %c0_i32, %arg0 : i32, i32
  }
  func.func @transform_1(%arg0: i32) -> (i32, i32) {
    %c0_i32 = arith.constant 0 : i32
    %c0_i32_0 = arith.constant 0 : i32
    %c0_i32_1 = arith.constant 0 : i32
    return %c0_i32, %c0_i32_0 : i32, i32
  }
  func.func @transform_2(%arg0: i32) -> (i32, i32) {
    %c0_i32 = arith.constant 0 : i32
    %c0_i32_0 = arith.constant 0 : i32
    %c0_i32_1 = arith.constant 0 : i32
    return %c0_i32, %c0_i32_0 : i32, i32
  }
  func.func @transform_3(%arg0: i32) -> (i32, i32) {
    %c0_i32 = arith.constant 0 : i32
    %c0_i32_0 = arith.constant 0 : i32
    return %c0_i32, %arg0 : i32, i32
  }
}

</mosaic_0001>

<bundles_post_ra>
// kernel: conv_block_discriminator.2
= control target key start
LH: loop header
LB: loop body
LE: loop exit
PB: predicated region body
PF: predicated region fallthrough
CT: control target
= control target key end

     0   :  { %s586_s15 = smov 0   ;;  %s588_s16 = smov 0   ;;  %s661_s0 = inlined_call_operand.vmem [shape: bf16[8,36], index: 0, kind: input, shape index: {}]   ;;  %s662_s1 = inlined_call_operand.vmem [shape: bf16[36,768], index: 1, kind: input, shape index: {}]   ;;  %s663_s2 = inlined_call_operand.vmem [shape: bf16[8,768], index: 2, kind: output, shape index: {0}]   ;;  %s664_s3 = inlined_call_operand.vmem [shape: f32[8,1], index: 3, kind: output, shape index: {1}]   ;;  %s665_s4 = inlined_call_operand.vmem [shape: f32[8,1], index: 4, kind: output, shape index: {2}]  }
   0x1   :  { %s590_s17 = smov 0  }
   0x2 LB: > { %s455_s18 = sadd.s32 4294967295, %s558_s17   ;;  %s603_s19 = sadd.s32 1, %s558_s17   ;;  %s558_s17 = sphi %s590_s17, %s668_s17   ;;  %s554_s16 = sphi %s588_s16, %s667_s16   ;;  %s550_s15 = sphi %s586_s15, %s666_s15  }
   0x3   : > { %s40_s20 = ssub.s32 %s558_s17, %s603_s19  ;;  %s43_s21 = sadd.s32 1, %s554_s16 }
   0x4   : > { %p41_p0 = scmp.eq.s32.totalorder %s40_s20, 0  ;;  %p50_p1 = scmp.ne.s32.totalorder %s554_s16, %s550_s15 }
   0x5   : > { %p51_p2 = scmp.eq.s32.totalorder %s558_s17, 0  ;;  %p458_p4 = scmp.ge.s32.totalorder %s558_s17, 2 }
   0x6   : > { %s612_s22 = scalar_select %p41_p0, %s554_s16, %s43_s21  }
   0x7   : > { %p52_p3 = por %p51_p2, %p50_p1  ;;  %147 = sbr.rel (%p458_p4) target bundleno = 27 (0x1b), region = 20 }
   0xc   : > { %150 = sbr.rel (!%p52_p3) target bundleno = 27 (0x1b), region = 24  ;;  %s152_s23 = sand.u32 (%p52_p3), 1, %s554_s16  }
   0xd   : > { %s502_s24 = smul.u32 (%p52_p3), 12, %s558_s17 }
   0xe   : > { %s509_s25 = smul.u32 (%p52_p3), 60, %s152_s23 }
   0xf   : > { %s157_s28 = scalar_lea.vmem (%p52_p3), %s662_s1, %s502_s24 }
  0x10   : > { %v172_v0 = vld [vmem:[%s157_s28] sm:$0xff] (%p52_p3)  ;;  %v174_v1 = vld [vmem:[%s157_s28 + $0x18] sm:$0xff] (%p52_p3)  ;;  %v176_v2 = vld [vmem:[%s157_s28 + $0x30] sm:$0xff] (%p52_p3)  ;;  %s154_s29 = scalar_lea.vmem (%p52_p3), [#allocation2], %s509_s25 }
  0x11   : > { %173 = vst [vmem:[%s154_s29] sm:$0xff] %v172_v0  ;;  %v178_v3 = vld [vmem:[%s157_s28 + $0x48] sm:$0xff]  ;;  %v180_v4 = vld [vmem:[%s157_s28 + $0x60] sm:$0xff]  ;;  %v464_v7 = vld [vmem:[%s157_s28 + $0x38] sm:$0xf] }
  0x12   : > { %175 = vst [vmem:[%s154_s29 + $0xc] sm:$0xff] %v174_v1  ;;  %v460_v5 = vld [vmem:[%s157_s28 + $0x8] sm:$0xf]  ;;  %v462_v6 = vld [vmem:[%s157_s28 + $0x20] sm:$0xf] }
  0x13   : > { %177 = vst [vmem:[%s154_s29 + $0x18] sm:$0xff] %v176_v2  ;;  %v466_v8 = vld [vmem:[%s157_s28 + $0x50] sm:$0xf]  ;;  %v468_v9 = vld [vmem:[%s157_s28 + $0x68] sm:$0xf] }
  0x14   : > { %179 = vst [vmem:[%s154_s29 + $0x24] sm:$0xff] %v178_v3 }
  0x15   : > { %181 = vst [vmem:[%s154_s29 + $0x30] sm:$0xff] %v180_v4 }
  0x16   : > { %461 = vst [vmem:[%s154_s29 + $0x8] sm:$0xf] %v460_v5 }
  0x17   : > { %463 = vst [vmem:[%s154_s29 + $0x14] sm:$0xf] %v462_v6 }
  0x18   : > { %465 = vst [vmem:[%s154_s29 + $0x20] sm:$0xf] %v464_v7 }
  0x19   : > { %467 = vst [vmem:[%s154_s29 + $0x2c] sm:$0xf] %v466_v8 }
  0x1a   : > { %469 = vst [vmem:[%s154_s29 + $0x38] sm:$0xf] %v468_v9 }
  0x1b PF: > { %p470_p5 = scmp.ge.s32.totalorder %s558_s17, 1  ;;  %p204_p6 = scmp.lt.s32.totalorder %s558_s17, 3 }
  0x1d   : > { %p205_p7 = pnand %p470_p5, %p204_p6 }
  0x1e   : > { %s211_s30 = sand.u32 (!%p205_p7), 1, %s550_s15   ;;  %s237_s9 = smul.u32 (!%p205_p7), 3, %s455_s18 }
  0x1f   : > { %208 = sbr.rel (%p205_p7) target bundleno = 328 (0x148), region = 50  ;;  %p499_p9 = scmp.ne.s32.totalorder (!%p205_p7), %s455_s18, 0 }
  0x20   : > { %s510_s5 = smul.u32 (!%p205_p7), 60, %s211_s30  ;;  %p238_p8 = scmp.lt.s32.totalorder (!%p205_p7), %s237_s9, 5 }
  0x22   : > { %s213_s6 = scalar_lea.vmem (!%p205_p7), [#allocation2], %s510_s5 }
  0x24   : > { %v253_v10 = vld [vmem:[%s213_s6 + $0x30] sm:$0x33]  ;;  %v254_v11 = vld [vmem:[%s213_s6 + $0x38] sm:$0x3]  ;;  %vm299_vm0 = vcmask 1041408   ;;  %vm295_vm1 = vcmask 293888  }
  0x25   : > { %v277_v12 = vunpack.c.l.b16 %v253_v10  ;;  %v278_v13 = vunpack.c.h.b16 %v253_v10  ;;  %v279_v14 = vunpack.c.l.b16 %v254_v11  ;;  %v486_v15 = vld [vmem:[%s213_s6 + $0x18] sm:$0xf]  ;;  %v507_v19 = vld [vmem:[%s213_s6 + $0x20] sm:$0xf0]  ;;  %v506_v20 = vld [vmem:[%s213_s6 + $0x1c] sm:$0xf] }
  0x26   : > { %v488_v21 = vld [vmem:[%s213_s6 + $0x24] sm:$0xf0]  ;;  %v494_v22 = vld [vmem:[%s213_s6 + $0x20] sm:$0xf]  ;;  %v508_v23 = vld [vmem:[%s213_s6 + $0x28] sm:$0xf0]  ;;  %v487_v27 = vor.u32 %v507_v19, %v486_v15 }
  0x27   : > { %v286_v16 = vpack.c.b16 %v277_v12, %v277_v12  ;;  %v287_v17 = vpack.c.b16 %v278_v13, %v278_v13  ;;  %v288_v18 = vpack.c.b16 %v279_v14, %v279_v14  ;;  %v491_v28 = vor.u32 %v506_v20, %v488_v21  ;;  %v474_v29 = vld [vmem:[%s213_s6] sm:$0xf]  ;;  %v504_v31 = vld [vmem:[%s213_s6 + $0x8] sm:$0xf0]  ;;  %v503_v32 = vld [vmem:[%s213_s6 + $0x4] sm:$0xf] }
  0x28   : > { %v495_v30 = vor.u32 %v508_v23, %v494_v22  ;;  %v476_v33 = vld [vmem:[%s213_s6 + $0xc] sm:$0xf0]  ;;  %v482_v34 = vld [vmem:[%s213_s6 + $0x8] sm:$0xf]  ;;  %v505_v35 = vld [vmem:[%s213_s6 + $0x10] sm:$0xf0]  ;;  %v475_v36 = vor.u32 %v504_v31, %v474_v29 }
  0x29   : > { %v301_v24 = vsel %vm299_vm0, %v286_v16, 0  ;;  %v304_v25 = vsel %vm299_vm0, %v287_v17, 0  ;;  %v307_v26 = vsel %vm299_vm0, %v288_v18, 0  ;;  %v479_v37 = vor.u32 %v503_v32, %v476_v33  ;;  %v244_v39 = vld [vmem:[%s661_s0] sm:$0xf]  ;;  %s670_s9 = smov (!%p238_p8, %s237_s9), 5 }
  0x2a   : > { %314 = vmatpush.bf16.msra.mxu0 %v301_v24  ;;  %327 = vmatpush.bf16.msra.mxu1 %v304_v25  ;;  %v483_v38 = vor.u32 %v505_v35, %v482_v34  ;;  %s471_s10 = sshll.u32 %s670_s9, 2 }
  0x2b   : > { %340 = vmatpush.bf16.msra.mxu2 %v307_v26  ;;  %s241_s13 = scalar_lea.vmem %s663_s2, %s471_s10 }
  0x2e   : > { %315 = vmatpush.bf16.msra.mxu0 %v487_v27  ;;  %328 = vmatpush.bf16.msra.mxu1 %v491_v28 }
  0x2f   : > { %341 = vmatpush.bf16.msra.mxu2 %v495_v30 }
  0x32   : > { %316 = vmatpush.bf16.msra.mxu0 %v475_v36  ;;  %329 = vmatpush.bf16.msra.mxu1 %v479_v37 }
  0x33   : > { %342 = vmatpush.bf16.msra.mxu2 %v483_v38 }
  0x35   : > { %496 = vmatmul.msk.bf16.vlgmr.msra.gmra.mxu0 %vm295_vm1, %v244_v39  ;;  %497 = vmatmul.msk.bf16.vlgmr.msra.gmra.mxu1 %vm295_vm1, %v244_v39 }
  0x36   : > { %498 = vmatmul.msk.bf16.vlgmr.msra.gmra.mxu2 %vm295_vm1, %v244_v39 }
  0xb2   : > { %v318_v40 = vpop.f32.mrf.mxu0  ;;  %v331_v41 = vpop.f32.mrf.mxu1 }
  0xb3   : > { %v348_v42 = vpack.c.bf16 %v331_v41, %v318_v40 }
  0xb5   : > { %350 = vst [vmem:[%s241_s13] sm:$0xff] %v348_v42 }
  0xb9   : > { %v344_v43 = vpop.f32.mrf.mxu2 }
  0xba   : > { %v349_v44 = vpack.c.bf16 %v344_v43, %v344_v43  ;;  %v320_v45 = vpop.f32.mrf.mxu0  ;;  %v333_v46 = vpop.f32.mrf.mxu1 }
  0xbc   : > { %351 = vst [vmem:[%s241_s13 + $0x8] sm:$0xf] %v349_v44 }
  0xbd   : > { %355 = sbr.rel (%p499_p9) target bundleno = 197 (0xc5), region = 58 }
  0xc1   : > { %v346_v47 = vpop.f32.mrf.mxu2 }
  0xc2   : > { %vm356_vm2 = vcmask 7168   ;;  %v560_v48 = vmov 0.0  }
  0xc3   : > { %357 = vst.msk [vmem:[%s664_s3] sm:$0xff] %vm356_vm2, %v560_v48 }
  0xc4   : > { %358 = vst.msk [vmem:[%s665_s4] sm:$0xff] %vm356_vm2, %v560_v48 }
  0xc5 PF: > { %v360_v49 = vadd.f32 %v331_v41, %v318_v40  ;;  %v368_v50 = vmul.f32 %v318_v40, %v318_v40  ;;  %v369_v51 = vmul.f32 %v331_v41, %v331_v41  ;;  %v370_v53 = vmul.f32 %v344_v43, %v344_v43 }
  0xc6   : > { %vm365_vm3 = vcmask 7168  }
  0xc7   : > { %v361_v52 = vadd.f32 %v360_v49, %v344_v43  ;;  %v371_v54 = vadd.f32 %v369_v51, %v368_v50 }
  0xc9   : > { %362 = vadd.xlane.f32.xlu0 %v361_v52  ;;  %v372_v55 = vadd.f32 %v371_v54, %v370_v53 }
  0xca   : > { %v359_v56 = vld [vmem:[%s664_s3] sm:$0xff] }
  0xcb   : > { %v367_v59 = vld [vmem:[%s665_s4] sm:$0xff] }
  0xd1   : > { %373 = vadd.xlane.f32.xlu0 %v372_v55 }
 0x13c   : > { %v363_v57 = vpop.xlane.xlu0 %362 }
 0x13d   : > { %v364_v58 = vadd.f32 %v363_v57, %v359_v56 }
 0x13f   : > { %366 = vst.msk [vmem:[%s664_s3] sm:$0xff] %vm365_vm3, %v364_v58 }
 0x144   : > { %v374_v60 = vpop.xlane.xlu0 %373 }
 0x145   : > { %v375_v61 = vadd.f32 %v374_v60, %v367_v59 }
 0x147   : > { %376 = vst.msk [vmem:[%s665_s4] sm:$0xff] %vm365_vm3, %v375_v61 }
 0x148 PF: > { %p12_p10 = scmp.ge.s32.totalorder %s603_s19, 4   ;;  %s666_s15 = smov %s554_s16 }
 0x149   : > { %s667_s16 = smov %s612_s22  ;;  %s668_s17 = smov %s603_s19 }
 0x14a   :  { %14 = sbr.rel (!%p12_p10) target bundleno = 2 (0x2), region = 115 }

// kernel: conv_block_discriminator.3
= control target key start
LH: loop header
LB: loop body
LE: loop exit
PB: predicated region body
PF: predicated region fallthrough
CT: control target
= control target key end

     0   :  { %s313_s12 = smov 0   ;;  %s336_s0 = inlined_call_operand.vmem [shape: bf16[8,768], index: 0, kind: input, shape index: {}]   ;;  %s337_s1 = inlined_call_operand.vmem [shape: f32[8,1], index: 1, kind: input, shape index: {}]   ;;  %s338_s2 = inlined_call_operand.vmem [shape: f32[8,1], index: 2, kind: input, shape index: {}]   ;;  %s339_s3 = inlined_call_operand.vmem [shape: f32[8,768], index: 3, kind: output, shape index: {}]  }
   0x1 LB: > { %s265_s13 = sadd.s32 4294967295, %s290_s12   ;;  %p269_p0 = scmp.ge.s32.totalorder %s290_s12, 1  ;;  %s290_s12 = sphi %s313_s12, %s13_s12  }
   0x2   : > { %p138_p1 = scmp.lt.s32.totalorder %s290_s12, 3 }
   0x4   : > { %p139_p2 = pnand %p269_p0, %p138_p1 }
   0x5   : > { %s162_s18 = smul.u32 (!%p139_p2), 3, %s265_s13 }
   0x6   : > { %142 = sbr.rel (%p139_p2) target bundleno = 144 (0x90), region = 32 }
   0x7   : > { %p163_p3 = scmp.lt.s32.totalorder (!%p139_p2), %s162_s18, 5 }
   0xb   : > { %v179_v0 = vld [vmem:[%s337_s1] sm:$0xff]  ;;  %v292_v1 = vmov 0   ;;  %s341_s18 = smov (!%p163_p3, %s162_s18), 5 }
   0xc   : > { %283 = vset.pattern.permute.xlu0 %v292_v1  ;;  %v188_v2 = vld [vmem:[%s338_s2] sm:$0xff]  ;;  %s270_s19 = sshll.u32 %s341_s18, 2  ;;  %s271_s23 = sshll.u32 %s341_s18, 3 }
   0xd   : > { %182 = vperm.xlu0 %283, %v179_v0   ;;  %s166_s22 = scalar_lea.vmem %s336_s0, %s270_s19  ;;  %s172_s26 = scalar_lea.vmem %s339_s3, %s271_s23 }
   0xe   : > { %v174_v4 = vld [vmem:[%s166_s22] sm:$0xff]  ;;  %v175_v5 = vld [vmem:[%s166_s22 + $0x8] sm:$0xf] }
   0xf   : > { %v176_v6 = vunpack.c.l.bf16 %v174_v4  ;;  %v177_v7 = vunpack.c.h.bf16 %v174_v4  ;;  %v178_v8 = vunpack.c.l.bf16 %v175_v5 }
  0x15   : > { %191 = vperm.xlu0 %283, %v188_v2  }
  0x7f   : > { %v183_v3 = vpop.permute.xlu0 %182 }
  0x80   : > { %v185_v9 = vmul.f32 %v183_v3, %v176_v6  ;;  %v186_v10 = vmul.f32 %v183_v3, %v177_v7  ;;  %v187_v11 = vmul.f32 %v183_v3, %v178_v8 }
  0x87   : > { %v192_v12 = vpop.permute.xlu0 %191 }
  0x88   : > { %v194_v13 = vadd.f32 %v192_v12, %v185_v9  ;;  %v195_v14 = vadd.f32 %v192_v12, %v186_v10  ;;  %v196_v15 = vadd.f32 %v192_v12, %v187_v11 }
  0x8a   : > { %vm197_vm0 = vcmp.ge.f32.partialorder %v194_v13, 0.0  ;;  %vm198_vm1 = vcmp.ge.f32.partialorder %v195_v14, 0.0  ;;  %vm199_vm2 = vcmp.ge.f32.partialorder %v196_v15, 0.0  ;;  %v200_v16 = vmul.f32 0.2, %v194_v13 }
  0x8b   : > { %v201_v17 = vmul.f32 0.2, %v195_v14  ;;  %v202_v18 = vmul.f32 0.2, %v196_v15 }
  0x8c   : > { %v203_v19 = vsel %vm197_vm0, %v194_v13, %v200_v16 }
  0x8d   : > { %v204_v20 = vsel %vm198_vm1, %v195_v14, %v201_v17  ;;  %v205_v21 = vsel %vm199_vm2, %v196_v15, %v202_v18  ;;  %206 = vst [vmem:[%s172_s26] sm:$0xff] %v203_v19 }
  0x8e   : > { %207 = vst [vmem:[%s172_s26 + $0x8] sm:$0xff] %v204_v20 }
  0x8f   : > { %208 = vst [vmem:[%s172_s26 + $0x10] sm:$0xff] %v205_v21 }
  0x90 PF: > { %s13_s12 = sadd.s32 1, %s290_s12  }
  0x91   : > { %p10_p4 = scmp.ge.s32.totalorder %s13_s12, 4  }
  0x93   :  { %12 = sbr.rel (!%p10_p4) target bundleno = 1 (0x1), region = 62 }

</bundles_post_ra>
